<compile_context>
chip_gen: v7x
topology: tpu7x:2x2x1
jax: 0.10.0
libtpu: 0.0.40
codegen_flags: <defaults>
</compile_context>

<pallas_src>
import functools

import numpy as np
import jax
import jax.numpy as jnp
from jax.experimental import pallas as pl
from jax.experimental.pallas import tpu as pltpu

LANE = 128   # final FC output columns are padded to the lane width -> dense stores
KSIZE = 5    # Conv1d kernel size
CPAD = 2     # Conv1d padding


# ----------------------------------------------------------------------------
# Fused kernel: one grid step == Bb samples, everything resident in VMEM.
# ----------------------------------------------------------------------------
def _fused_kernel(x_ref, w1_ref, b1_ref, w2_ref, b2_ref, adj_ref,
                  gw1_ref, gb1_ref, gw2_ref, gb2_ref, pmat_ref,
                  fw1_ref, fb1_ref, fw2_ref, fb2_ref,
                  out_ref,
                  c1_ref, p1pad_ref, c2_ref,
                  *, Bb, T, T2, Tr, c_in, c1, c2):
    f32, bf16 = jnp.float32, jnp.bfloat16

    # ---- Conv1d(c_in->c1, k=5, p=2) + folded BN + ReLU ----------------------
    # Exact-K bf16 taps, f32 accumulation, M = Bb*T rows per MXU pass.
    acc = jnp.zeros((Bb * T, c1), f32)
    for k in range(KSIZE):
        xk = x_ref[:, pl.ds(k, T), :].reshape(Bb * T, c_in)
        acc += jnp.dot(xk, w1_ref[k], preferred_element_type=f32)
    c1_ref[...] = jnp.maximum(acc + b1_ref[...], 0.0)

    # ---- MaxPool1d(2): strided even/odd row reads (pairs never straddle a
    # sample boundary because T is even) --------------------------------------
    p1 = jnp.maximum(c1_ref[pl.ds(0, Bb * T2, 2), :],
                     c1_ref[pl.ds(1, Bb * T2, 2), :])            # (Bb*T2, c1)

    # ---- per-sample zero time-padding for conv2 (only pad rows are zeroed) ---
    p1pad_ref[:, 0:CPAD, :] = jnp.zeros((Bb, CPAD, c1), f32)
    p1pad_ref[:, CPAD + T2:CPAD + T2 + CPAD, :] = jnp.zeros((Bb, CPAD, c1), f32)
    p1pad_ref[:, CPAD:CPAD + T2, :] = p1.reshape(Bb, T2, c1)

    # ---- Conv1d(c1->c2, k=5, p=2) + folded BN + ReLU -------------------------
    acc = jnp.zeros((Bb * T2, c2), f32)
    for k in range(KSIZE):
        pk = p1pad_ref[:, pl.ds(k, T2), :].reshape(Bb * T2, c1).astype(bf16)
        acc += jnp.dot(pk, w2_ref[k], preferred_element_type=f32)
    c2_ref[...] = jnp.maximum(acc + b2_ref[...], 0.0)

    # ---- MaxPool1d(2) -> graph nodes -----------------------------------------
    nodes = jnp.maximum(c2_ref[pl.ds(0, Bb * Tr, 2), :],
                        c2_ref[pl.ds(1, Bb * Tr, 2), :])         # (Bb*Tr, c2)

    # ---- GCNConv x2: relu(A_norm @ (X @ W) + b), block-diagonal A_norm over
    # all Bb*Tr batched nodes ---------------------------------------------------
    a_norm = adj_ref[...]
    h = jnp.dot(nodes.astype(bf16), gw1_ref[...], preferred_element_type=f32)
    h = jnp.maximum(jnp.dot(a_norm, h, preferred_element_type=f32)
                    + gb1_ref[...], 0.0)
    h = jnp.dot(h.astype(bf16), gw2_ref[...], preferred_element_type=f32)
    h = jnp.maximum(jnp.dot(a_norm, h, preferred_element_type=f32)
                    + gb2_ref[...], 0.0)                         # (Bb*Tr, hid)

    # ---- per-sample mean pool over reduced timesteps (constant matrix) -------
    pooled = jnp.dot(pmat_ref[...], h, preferred_element_type=f32)   # (Bb, hid)

    # ---- FC head: Linear -> ReLU -> Linear (out columns lane-padded to 128) --
    z = jnp.maximum(jnp.dot(pooled.astype(bf16), fw1_ref[...],
                            preferred_element_type=f32) + fb1_ref[...], 0.0)
    out_ref[...] = (jnp.dot(z.astype(bf16), fw2_ref[...],
                            preferred_element_type=f32) + fb2_ref[...])


# ----------------------------------------------------------------------------
# Host-side parameter packing and graph constants (all input-independent).
# ----------------------------------------------------------------------------
def _conv_bn_taps(w_oik, b_o, eps=1e-5):
    """Fold eval-mode BatchNorm1d (default running stats) into Conv1d weights.

    Returns (KSIZE, c_in, c_out) bf16 taps and a (1, c_out) f32 bias."""
    scale = 1.0 / np.sqrt(1.0 + eps)            # gamma=1, beta=0, mean=0, var=1
    taps = jnp.transpose(w_oik, (2, 1, 0)) * scale          # (k, c_in, c_out)
    bias = (b_o * scale).reshape(1, -1)
    return taps.astype(jnp.bfloat16), bias.astype(jnp.float32)


def _chain_adj_norm(num_nodes):
    """D^{-1/2} (A + I) D^{-1/2} for the per-sample bidirectional temporal chain."""
    a = np.eye(num_nodes, dtype=np.float32)
    i = np.arange(num_nodes - 1)
    a[i, i + 1] = 1.0
    a[i + 1, i] = 1.0
    deg = a.sum(axis=1)
    return a / np.sqrt(np.outer(deg, deg))


def _choose_grid(batch, T):
    """Pick (grid_steps, samples_per_step).

    Targets Bb*T >= 256 conv-matmul rows (fills v6e/v7x MXU; v5e needs 128) and
    keeps >= 2 grid steps when the batch is large enough so both v7x
    TensorCores get work; small batches run as a single full-batch step."""
    target_rows = 256
    if batch * T < 2 * target_rows:
        return 1, batch
    bb = max(1, -(-target_rows // T))           # ceil(256 / T)
    bb = min(bb, -(-batch // 2))                # keep at least 2 steps
    if bb < batch:
        bb = min(((bb + 7) // 8) * 8, batch)    # sublane-aligned output blocks
        if bb == batch:
            return 1, batch
    g = -(-batch // bb)
    return g, bb


# ----------------------------------------------------------------------------
# TemporalGCN forward
# ----------------------------------------------------------------------------
def temporal_gcn_forward(params, x_bct):
    B, c_in, T = x_bct.shape
    # Two MaxPool1d(2) stages; T % 16 == 0 also keeps every in-kernel reshape
    # (8, lane)-tile aligned.
    assert T % 16 == 0, "timesteps must be a multiple of 16"
    T2, Tr = T // 2, T // 4
    c1 = params["conv1_w"].shape[0]
    c2 = params["conv2_w"].shape[0]
    hid = params["gcn1_w"].shape[1]
    out_dim = params["fc2_w"].shape[1]

    G, Bb = _choose_grid(B, T)
    Bpad = G * Bb

    # (B, C, T) -> (B, T, C); zero time-pad for conv1; pad batch to G*Bb;
    # bf16 for the MXU.  No lane padding - the kernel uses the exact c_in.
    x = jnp.transpose(x_bct, (0, 2, 1))
    x = jnp.pad(x, ((0, Bpad - B), (CPAD, CPAD), (0, 0))).astype(jnp.bfloat16)

    w1, b1 = _conv_bn_taps(params["conv1_w"], params["conv1_b"])
    w2, b2 = _conv_bn_taps(params["conv2_w"], params["conv2_b"])
    bf = jnp.bfloat16
    gw1 = params["gcn1_w"].astype(bf)
    gb1 = params["gcn1_b"].reshape(1, -1).astype(jnp.float32)
    gw2 = params["gcn2_w"].astype(bf)
    gb2 = params["gcn2_b"].reshape(1, -1).astype(jnp.float32)
    fw1 = params["fc1_w"].astype(bf)
    fb1 = params["fc1_b"].reshape(1, -1).astype(jnp.float32)
    # Final layer lane-padded to 128 output columns -> dense (Bb, 128) stores.
    fw2 = jnp.zeros((hid, LANE), bf).at[:, :out_dim].set(params["fc2_w"].astype(bf))
    fb2 = jnp.zeros((1, LANE), jnp.float32).at[0, :out_dim].set(params["fc2_b"])

    # Block-diagonal normalized adjacency and mean-pool matrix for Bb samples.
    adj = jnp.asarray(np.kron(np.eye(Bb, dtype=np.float32), _chain_adj_norm(Tr)))
    pmat = jnp.asarray(np.kron(np.eye(Bb, dtype=np.float32),
                               np.full((1, Tr), 1.0 / Tr, np.float32)))

    kernel = functools.partial(_fused_kernel, Bb=Bb, T=T, T2=T2, Tr=Tr,
                               c_in=c_in, c1=c1, c2=c2)
    rep2 = lambda g: (0, 0)
    rep3 = lambda g: (0, 0, 0)

    out = pl.pallas_call(
        kernel,
        out_shape=jax.ShapeDtypeStruct((Bpad, LANE), jnp.float32),
        grid=(G,),
        in_specs=[
            pl.BlockSpec((Bb, T + 2 * CPAD, c_in), lambda g: (g, 0, 0)),  # x
            pl.BlockSpec((KSIZE, c_in, c1), rep3),                        # conv1 w
            pl.BlockSpec((1, c1), rep2),                                  # conv1 b
            pl.BlockSpec((KSIZE, c1, c2), rep3),                          # conv2 w
            pl.BlockSpec((1, c2), rep2),                                  # conv2 b
            pl.BlockSpec((Bb * Tr, Bb * Tr), rep2),                       # A_norm
            pl.BlockSpec((c2, hid), rep2),                                # gcn1 w
            pl.BlockSpec((1, hid), rep2),                                 # gcn1 b
            pl.BlockSpec((hid, hid), rep2),                               # gcn2 w
            pl.BlockSpec((1, hid), rep2),                                 # gcn2 b
            pl.BlockSpec((Bb, Bb * Tr), rep2),                            # mean-pool
            pl.BlockSpec((hid, hid), rep2),                               # fc1 w
            pl.BlockSpec((1, hid), rep2),                                 # fc1 b
            pl.BlockSpec((hid, LANE), rep2),                              # fc2 w
            pl.BlockSpec((1, LANE), rep2),                                # fc2 b
        ],
        out_specs=pl.BlockSpec((Bb, LANE), lambda g: (g, 0)),
        scratch_shapes=[
            pltpu.VMEM((Bb * T, c1), jnp.float32),              # conv1 output
            pltpu.VMEM((Bb, T2 + 2 * CPAD, c1), jnp.float32),   # padded conv2 input
            pltpu.VMEM((Bb * T2, c2), jnp.float32),             # conv2 output
        ],
        compiler_params=pltpu.CompilerParams(
            dimension_semantics=("parallel",)),
    )(x, w1, b1, w2, b2, adj, gw1, gb1, gw2, gb2, pmat, fw1, fb1, fw2, fb2)

    return out[:B, :out_dim]


# ----------------------------------------------------------------------------
# Parameter init (PyTorch-shaped tensors)
# ----------------------------------------------------------------------------
def init_params(key, input_dim, hidden_dim, output_dim):
    ks = jax.random.split(key, 12)

    def w(k, shape, scale=0.1):
        return jax.random.normal(k, shape, jnp.float32) * scale

    return {
        # nn.Conv1d(input_dim, 16, kernel_size=5, padding=2)
        "conv1_w": w(ks[0], (16, input_dim, 5)),
        "conv1_b": w(ks[1], (16,)),
        # nn.Conv1d(16, 32, kernel_size=5, padding=2)
        "conv2_w": w(ks[2], (32, 16, 5)),
        "conv2_b": w(ks[3], (32,)),
        # GCNConv(32, hidden_dim)
        "gcn1_w": w(ks[4], (32, hidden_dim)),
        "gcn1_b": w(ks[5], (hidden_dim,)),
        # GCNConv(hidden_dim, hidden_dim)
        "gcn2_w": w(ks[6], (hidden_dim, hidden_dim)),
        "gcn2_b": w(ks[7], (hidden_dim,)),
        # fc: Linear(hidden, hidden) -> ReLU -> Linear(hidden, output)
        "fc1_w": w(ks[8], (hidden_dim, hidden_dim)),
        "fc1_b": w(ks[9], (hidden_dim,)),
        "fc2_w": w(ks[10], (hidden_dim, output_dim)),
        "fc2_b": w(ks[11], (output_dim,)),
    }


if __name__ == "__main__":
    input_dim, hidden_dim, output_dim = 4, 32, 8
    batch, timesteps = 2, 16

    key = jax.random.PRNGKey(0)
    k_x, k_p = jax.random.split(key)
    x = jax.random.normal(k_x, (batch, input_dim, timesteps), jnp.float32)
    params = init_params(k_p, input_dim, hidden_dim, output_dim)

    fwd = jax.jit(temporal_gcn_forward)
    logits = fwd(params, x)
    jax.block_until_ready(logits)

    assert logits.shape == (batch, output_dim)
    assert bool(jnp.all(jnp.isfinite(logits)))
    print("KERNEL_OK")
</pallas_src>

<mosaic_0001>
module attributes {stable_mosaic.version = 11 : i64} {
  func.func @_fused_kernel(%arg0: i32, %arg1: memref<2x20x4xbf16, #tpu.memory_space<vmem>>, %arg2: memref<5x4x16xbf16, #tpu.memory_space<vmem>>, %arg3: memref<1x16xf32, #tpu.memory_space<vmem>>, %arg4: memref<5x16x32xbf16, #tpu.memory_space<vmem>>, %arg5: memref<1x32xf32, #tpu.memory_space<vmem>>, %arg6: memref<8x8xf32, #tpu.memory_space<vmem>>, %arg7: memref<32x32xbf16, #tpu.memory_space<vmem>>, %arg8: memref<1x32xf32, #tpu.memory_space<vmem>>, %arg9: memref<32x32xbf16, #tpu.memory_space<vmem>>, %arg10: memref<1x32xf32, #tpu.memory_space<vmem>>, %arg11: memref<2x8xf32, #tpu.memory_space<vmem>>, %arg12: memref<32x32xbf16, #tpu.memory_space<vmem>>, %arg13: memref<1x32xf32, #tpu.memory_space<vmem>>, %arg14: memref<32x128xbf16, #tpu.memory_space<vmem>>, %arg15: memref<1x128xf32, #tpu.memory_space<vmem>>, %arg16: memref<2x128xf32, #tpu.memory_space<vmem>>, %arg17: memref<32x16xf32, #tpu.memory_space<vmem>>, %arg18: memref<2x12x16xf32, #tpu.memory_space<vmem>>, %arg19: memref<16x32xf32, #tpu.memory_space<vmem>>) attributes {dimension_semantics = [#tpu.dimension_semantics<parallel>], iteration_bounds = array<i64: 1>, scalar_prefetch = 0 : i64, scratch_operands = 3 : i64, tpu.core_type = #tpu.core_type<tc>, window_params = [{transform_indices = @transform_0, window_bounds = array<i64: 2, 20, 4>}, {pipeline_mode = #tpu.pipeline_mode<synchronous>, transform_indices = @transform_1, window_bounds = array<i64: 5, 4, 16>}, {pipeline_mode = #tpu.pipeline_mode<synchronous>, transform_indices = @transform_2, window_bounds = array<i64: 1, 16>}, {pipeline_mode = #tpu.pipeline_mode<synchronous>, transform_indices = @transform_3, window_bounds = array<i64: 5, 16, 32>}, {pipeline_mode = #tpu.pipeline_mode<synchronous>, transform_indices = @transform_4, window_bounds = array<i64: 1, 32>}, {pipeline_mode = #tpu.pipeline_mode<synchronous>, transform_indices = @transform_5, window_bounds = array<i64: 8, 8>}, {pipeline_mode = #tpu.pipeline_mode<synchronous>, transform_indices = @transform_6, window_bounds = array<i64: 32, 32>}, {pipeline_mode = #tpu.pipeline_mode<synchronous>, transform_indices = @transform_7, window_bounds = array<i64: 1, 32>}, {pipeline_mode = #tpu.pipeline_mode<synchronous>, transform_indices = @transform_8, window_bounds = array<i64: 32, 32>}, {pipeline_mode = #tpu.pipeline_mode<synchronous>, transform_indices = @transform_9, window_bounds = array<i64: 1, 32>}, {pipeline_mode = #tpu.pipeline_mode<synchronous>, transform_indices = @transform_10, window_bounds = array<i64: 2, 8>}, {pipeline_mode = #tpu.pipeline_mode<synchronous>, transform_indices = @transform_11, window_bounds = array<i64: 32, 32>}, {pipeline_mode = #tpu.pipeline_mode<synchronous>, transform_indices = @transform_12, window_bounds = array<i64: 1, 32>}, {pipeline_mode = #tpu.pipeline_mode<synchronous>, transform_indices = @transform_13, window_bounds = array<i64: 32, 128>}, {pipeline_mode = #tpu.pipeline_mode<synchronous>, transform_indices = @transform_14, window_bounds = array<i64: 1, 128>}, {transform_indices = @transform_15, window_bounds = array<i64: 2, 128>}]} {
    %cst = arith.constant 0.000000e+00 : f32
    %0 = vector.broadcast %cst : f32 to vector<32x16xf32>
    %c0 = arith.constant 0 : index
    %c0_0 = arith.constant 0 : index
    %c0_1 = arith.constant 0 : index
    %1 = vector.load %arg1[%c0, %c0_0, %c0_1] : memref<2x20x4xbf16, #tpu.memory_space<vmem>>, vector<2x16x4xbf16>
    %2 = vector.shape_cast %1 : vector<2x16x4xbf16> to vector<32x4xbf16>
    %c0_2 = arith.constant 0 : index
    %c0_3 = arith.constant 0 : index
    %c0_4 = arith.constant 0 : index
    %3 = vector.load %arg2[%c0_2, %c0_3, %c0_4] : memref<5x4x16xbf16, #tpu.memory_space<vmem>>, vector<1x4x16xbf16>
    %4 = vector.shape_cast %3 : vector<1x4x16xbf16> to vector<4x16xbf16>
    %cst_5 = arith.constant dense<0.000000e+00> : vector<32x16xf32>
    %5 = tpu.matmul %2, %4, %cst_5 {dimension_numbers = #tpu.dot_dimension_numbers<[1], [0], [0], [1], [0, 0, 1, 1], [], []>} : vector<32x4xbf16>, vector<4x16xbf16>, vector<32x16xf32> -> vector<32x16xf32>
    %6 = arith.addf %0, %5 : vector<32x16xf32>
    %c0_6 = arith.constant 0 : index
    %c1 = arith.constant 1 : index
    %c0_7 = arith.constant 0 : index
    %7 = vector.load %arg1[%c0_6, %c1, %c0_7] : memref<2x20x4xbf16, #tpu.memory_space<vmem>>, vector<2x16x4xbf16>
    %8 = vector.shape_cast %7 : vector<2x16x4xbf16> to vector<32x4xbf16>
    %c1_8 = arith.constant 1 : index
    %c0_9 = arith.constant 0 : index
    %c0_10 = arith.constant 0 : index
    %9 = vector.load %arg2[%c1_8, %c0_9, %c0_10] : memref<5x4x16xbf16, #tpu.memory_space<vmem>>, vector<1x4x16xbf16>
    %10 = vector.shape_cast %9 : vector<1x4x16xbf16> to vector<4x16xbf16>
    %cst_11 = arith.constant dense<0.000000e+00> : vector<32x16xf32>
    %11 = tpu.matmul %8, %10, %cst_11 {dimension_numbers = #tpu.dot_dimension_numbers<[1], [0], [0], [1], [0, 0, 1, 1], [], []>} : vector<32x4xbf16>, vector<4x16xbf16>, vector<32x16xf32> -> vector<32x16xf32>
    %12 = arith.addf %6, %11 : vector<32x16xf32>
    %c0_12 = arith.constant 0 : index
    %c2 = arith.constant 2 : index
    %c0_13 = arith.constant 0 : index
    %13 = vector.load %arg1[%c0_12, %c2, %c0_13] : memref<2x20x4xbf16, #tpu.memory_space<vmem>>, vector<2x16x4xbf16>
    %14 = vector.shape_cast %13 : vector<2x16x4xbf16> to vector<32x4xbf16>
    %c2_14 = arith.constant 2 : index
    %c0_15 = arith.constant 0 : index
    %c0_16 = arith.constant 0 : index
    %15 = vector.load %arg2[%c2_14, %c0_15, %c0_16] : memref<5x4x16xbf16, #tpu.memory_space<vmem>>, vector<1x4x16xbf16>
    %16 = vector.shape_cast %15 : vector<1x4x16xbf16> to vector<4x16xbf16>
    %cst_17 = arith.constant dense<0.000000e+00> : vector<32x16xf32>
    %17 = tpu.matmul %14, %16, %cst_17 {dimension_numbers = #tpu.dot_dimension_numbers<[1], [0], [0], [1], [0, 0, 1, 1], [], []>} : vector<32x4xbf16>, vector<4x16xbf16>, vector<32x16xf32> -> vector<32x16xf32>
    %18 = arith.addf %12, %17 : vector<32x16xf32>
    %c0_18 = arith.constant 0 : index
    %c3 = arith.constant 3 : index
    %c0_19 = arith.constant 0 : index
    %19 = vector.load %arg1[%c0_18, %c3, %c0_19] : memref<2x20x4xbf16, #tpu.memory_space<vmem>>, vector<2x16x4xbf16>
    %20 = vector.shape_cast %19 : vector<2x16x4xbf16> to vector<32x4xbf16>
    %c3_20 = arith.constant 3 : index
    %c0_21 = arith.constant 0 : index
    %c0_22 = arith.constant 0 : index
    %21 = vector.load %arg2[%c3_20, %c0_21, %c0_22] : memref<5x4x16xbf16, #tpu.memory_space<vmem>>, vector<1x4x16xbf16>
    %22 = vector.shape_cast %21 : vector<1x4x16xbf16> to vector<4x16xbf16>
    %cst_23 = arith.constant dense<0.000000e+00> : vector<32x16xf32>
    %23 = tpu.matmul %20, %22, %cst_23 {dimension_numbers = #tpu.dot_dimension_numbers<[1], [0], [0], [1], [0, 0, 1, 1], [], []>} : vector<32x4xbf16>, vector<4x16xbf16>, vector<32x16xf32> -> vector<32x16xf32>
    %24 = arith.addf %18, %23 : vector<32x16xf32>
    %c0_24 = arith.constant 0 : index
    %c4 = arith.constant 4 : index
    %c0_25 = arith.constant 0 : index
    %25 = vector.load %arg1[%c0_24, %c4, %c0_25] : memref<2x20x4xbf16, #tpu.memory_space<vmem>>, vector<2x16x4xbf16>
    %26 = vector.shape_cast %25 : vector<2x16x4xbf16> to vector<32x4xbf16>
    %c4_26 = arith.constant 4 : index
    %c0_27 = arith.constant 0 : index
    %c0_28 = arith.constant 0 : index
    %27 = vector.load %arg2[%c4_26, %c0_27, %c0_28] : memref<5x4x16xbf16, #tpu.memory_space<vmem>>, vector<1x4x16xbf16>
    %28 = vector.shape_cast %27 : vector<1x4x16xbf16> to vector<4x16xbf16>
    %cst_29 = arith.constant dense<0.000000e+00> : vector<32x16xf32>
    %29 = tpu.matmul %26, %28, %cst_29 {dimension_numbers = #tpu.dot_dimension_numbers<[1], [0], [0], [1], [0, 0, 1, 1], [], []>} : vector<32x4xbf16>, vector<4x16xbf16>, vector<32x16xf32> -> vector<32x16xf32>
    %30 = arith.addf %24, %29 : vector<32x16xf32>
    %c0_30 = arith.constant 0 : index
    %c0_31 = arith.constant 0 : index
    %31 = vector.load %arg3[%c0_30, %c0_31] : memref<1x16xf32, #tpu.memory_space<vmem>>, vector<1x16xf32>
    %32 = vector.broadcast %31 : vector<1x16xf32> to vector<32x16xf32>
    %33 = arith.addf %30, %32 : vector<32x16xf32>
    %cst_32 = arith.constant 0.000000e+00 : f32
    %34 = vector.broadcast %cst_32 : f32 to vector<32x16xf32>
    %35 = arith.maximumf %33, %34 : vector<32x16xf32>
    %c0_33 = arith.constant 0 : index
    %c0_34 = arith.constant 0 : index
    %36 = vector.load %arg17[%c0_33, %c0_34] : memref<32x16xf32, #tpu.memory_space<vmem>>, vector<32x16xf32>
    tpu.vector_store %arg17[%c0_33, %c0_34], %35 {strides = array<i32>} : memref<32x16xf32, #tpu.memory_space<vmem>>, vector<32x16xf32>,
    %c0_35 = arith.constant 0 : index
    %c0_36 = arith.constant 0 : index
    %37 = tpu.strided_load %arg17[%c0_35, %c0_36] {strides = array<i32: 2, 1>} : memref<32x16xf32, #tpu.memory_space<vmem>>, vector<16x16xf32>
    %c1_37 = arith.constant 1 : index
    %c0_38 = arith.constant 0 : index
    %38 = tpu.strided_load %arg17[%c1_37, %c0_38] {strides = array<i32: 2, 1>} : memref<32x16xf32, #tpu.memory_space<vmem>>, vector<16x16xf32>
    %39 = arith.maximumf %37, %38 : vector<16x16xf32>
    %cst_39 = arith.constant 0.000000e+00 : f32
    %40 = vector.broadcast %cst_39 : f32 to vector<2x2x16xf32>
    %c0_40 = arith.constant 0 : index
    %c0_41 = arith.constant 0 : index
    %c0_42 = arith.constant 0 : index
    %41 = vector.load %arg18[%c0_40, %c0_41, %c0_42] : memref<2x12x16xf32, #tpu.memory_space<vmem>>, vector<2x2x16xf32>
    tpu.vector_store %arg18[%c0_40, %c0_41, %c0_42], %40 {strides = array<i32>} : memref<2x12x16xf32, #tpu.memory_space<vmem>>, vector<2x2x16xf32>,
    %cst_43 = arith.constant 0.000000e+00 : f32
    %42 = vector.broadcast %cst_43 : f32 to vector<2x2x16xf32>
    %c0_44 = arith.constant 0 : index
    %c10 = arith.constant 10 : index
    %c0_45 = arith.constant 0 : index
    %43 = vector.load %arg18[%c0_44, %c10, %c0_45] : memref<2x12x16xf32, #tpu.memory_space<vmem>>, vector<2x2x16xf32>
    tpu.vector_store %arg18[%c0_44, %c10, %c0_45], %42 {strides = array<i32>} : memref<2x12x16xf32, #tpu.memory_space<vmem>>, vector<2x2x16xf32>,
    %44 = vector.shape_cast %39 : vector<16x16xf32> to vector<2x8x16xf32>
    %c0_46 = arith.constant 0 : index
    %c2_47 = arith.constant 2 : index
    %c0_48 = arith.constant 0 : index
    %45 = vector.load %arg18[%c0_46, %c2_47, %c0_48] : memref<2x12x16xf32, #tpu.memory_space<vmem>>, vector<2x8x16xf32>
    tpu.vector_store %arg18[%c0_46, %c2_47, %c0_48], %44 {strides = array<i32>} : memref<2x12x16xf32, #tpu.memory_space<vmem>>, vector<2x8x16xf32>,
    %cst_49 = arith.constant 0.000000e+00 : f32
    %46 = vector.broadcast %cst_49 : f32 to vector<16x32xf32>
    %c0_50 = arith.constant 0 : index
    %c0_51 = arith.constant 0 : index
    %c0_52 = arith.constant 0 : index
    %47 = vector.load %arg18[%c0_50, %c0_51, %c0_52] : memref<2x12x16xf32, #tpu.memory_space<vmem>>, vector<2x8x16xf32>
    %48 = vector.shape_cast %47 : vector<2x8x16xf32> to vector<16x16xf32>
    %49 = arith.truncf %48 : vector<16x16xf32> to vector<16x16xbf16>
    %c0_53 = arith.constant 0 : index
    %c0_54 = arith.constant 0 : index
    %c0_55 = arith.constant 0 : index
    %50 = vector.load %arg4[%c0_53, %c0_54, %c0_55] : memref<5x16x32xbf16, #tpu.memory_space<vmem>>, vector<1x16x32xbf16>
    %51 = vector.shape_cast %50 : vector<1x16x32xbf16> to vector<16x32xbf16>
    %cst_56 = arith.constant dense<0.000000e+00> : vector<16x32xf32>
    %52 = tpu.matmul %49, %51, %cst_56 {dimension_numbers = #tpu.dot_dimension_numbers<[1], [0], [0], [1], [0, 0, 1, 1], [], []>} : vector<16x16xbf16>, vector<16x32xbf16>, vector<16x32xf32> -> vector<16x32xf32>
    %53 = arith.addf %46, %52 : vector<16x32xf32>
    %c0_57 = arith.constant 0 : index
    %c1_58 = arith.constant 1 : index
    %c0_59 = arith.constant 0 : index
    %54 = vector.load %arg18[%c0_57, %c1_58, %c0_59] : memref<2x12x16xf32, #tpu.memory_space<vmem>>, vector<2x8x16xf32>
    %55 = vector.shape_cast %54 : vector<2x8x16xf32> to vector<16x16xf32>
    %56 = arith.truncf %55 : vector<16x16xf32> to vector<16x16xbf16>
    %c1_60 = arith.constant 1 : index
    %c0_61 = arith.constant 0 : index
    %c0_62 = arith.constant 0 : index
    %57 = vector.load %arg4[%c1_60, %c0_61, %c0_62] : memref<5x16x32xbf16, #tpu.memory_space<vmem>>, vector<1x16x32xbf16>
    %58 = vector.shape_cast %57 : vector<1x16x32xbf16> to vector<16x32xbf16>
    %cst_63 = arith.constant dense<0.000000e+00> : vector<16x32xf32>
    %59 = tpu.matmul %56, %58, %cst_63 {dimension_numbers = #tpu.dot_dimension_numbers<[1], [0], [0], [1], [0, 0, 1, 1], [], []>} : vector<16x16xbf16>, vector<16x32xbf16>, vector<16x32xf32> -> vector<16x32xf32>
    %60 = arith.addf %53, %59 : vector<16x32xf32>
    %c0_64 = arith.constant 0 : index
    %c2_65 = arith.constant 2 : index
    %c0_66 = arith.constant 0 : index
    %61 = vector.load %arg18[%c0_64, %c2_65, %c0_66] : memref<2x12x16xf32, #tpu.memory_space<vmem>>, vector<2x8x16xf32>
    %62 = vector.shape_cast %61 : vector<2x8x16xf32> to vector<16x16xf32>
    %63 = arith.truncf %62 : vector<16x16xf32> to vector<16x16xbf16>
    %c2_67 = arith.constant 2 : index
    %c0_68 = arith.constant 0 : index
    %c0_69 = arith.constant 0 : index
    %64 = vector.load %arg4[%c2_67, %c0_68, %c0_69] : memref<5x16x32xbf16, #tpu.memory_space<vmem>>, vector<1x16x32xbf16>
    %65 = vector.shape_cast %64 : vector<1x16x32xbf16> to vector<16x32xbf16>
    %cst_70 = arith.constant dense<0.000000e+00> : vector<16x32xf32>
    %66 = tpu.matmul %63, %65, %cst_70 {dimension_numbers = #tpu.dot_dimension_numbers<[1], [0], [0], [1], [0, 0, 1, 1], [], []>} : vector<16x16xbf16>, vector<16x32xbf16>, vector<16x32xf32> -> vector<16x32xf32>
    %67 = arith.addf %60, %66 : vector<16x32xf32>
    %c0_71 = arith.constant 0 : index
    %c3_72 = arith.constant 3 : index
    %c0_73 = arith.constant 0 : index
    %68 = vector.load %arg18[%c0_71, %c3_72, %c0_73] : memref<2x12x16xf32, #tpu.memory_space<vmem>>, vector<2x8x16xf32>
    %69 = vector.shape_cast %68 : vector<2x8x16xf32> to vector<16x16xf32>
    %70 = arith.truncf %69 : vector<16x16xf32> to vector<16x16xbf16>
    %c3_74 = arith.constant 3 : index
    %c0_75 = arith.constant 0 : index
    %c0_76 = arith.constant 0 : index
    %71 = vector.load %arg4[%c3_74, %c0_75, %c0_76] : memref<5x16x32xbf16, #tpu.memory_space<vmem>>, vector<1x16x32xbf16>
    %72 = vector.shape_cast %71 : vector<1x16x32xbf16> to vector<16x32xbf16>
    %cst_77 = arith.constant dense<0.000000e+00> : vector<16x32xf32>
    %73 = tpu.matmul %70, %72, %cst_77 {dimension_numbers = #tpu.dot_dimension_numbers<[1], [0], [0], [1], [0, 0, 1, 1], [], []>} : vector<16x16xbf16>, vector<16x32xbf16>, vector<16x32xf32> -> vector<16x32xf32>
    %74 = arith.addf %67, %73 : vector<16x32xf32>
    %c0_78 = arith.constant 0 : index
    %c4_79 = arith.constant 4 : index
    %c0_80 = arith.constant 0 : index
    %75 = vector.load %arg18[%c0_78, %c4_79, %c0_80] : memref<2x12x16xf32, #tpu.memory_space<vmem>>, vector<2x8x16xf32>
    %76 = vector.shape_cast %75 : vector<2x8x16xf32> to vector<16x16xf32>
    %77 = arith.truncf %76 : vector<16x16xf32> to vector<16x16xbf16>
    %c4_81 = arith.constant 4 : index
    %c0_82 = arith.constant 0 : index
    %c0_83 = arith.constant 0 : index
    %78 = vector.load %arg4[%c4_81, %c0_82, %c0_83] : memref<5x16x32xbf16, #tpu.memory_space<vmem>>, vector<1x16x32xbf16>
    %79 = vector.shape_cast %78 : vector<1x16x32xbf16> to vector<16x32xbf16>
    %cst_84 = arith.constant dense<0.000000e+00> : vector<16x32xf32>
    %80 = tpu.matmul %77, %79, %cst_84 {dimension_numbers = #tpu.dot_dimension_numbers<[1], [0], [0], [1], [0, 0, 1, 1], [], []>} : vector<16x16xbf16>, vector<16x32xbf16>, vector<16x32xf32> -> vector<16x32xf32>
    %81 = arith.addf %74, %80 : vector<16x32xf32>
    %c0_85 = arith.constant 0 : index
    %c0_86 = arith.constant 0 : index
    %82 = vector.load %arg5[%c0_85, %c0_86] : memref<1x32xf32, #tpu.memory_space<vmem>>, vector<1x32xf32>
    %83 = vector.broadcast %82 : vector<1x32xf32> to vector<16x32xf32>
    %84 = arith.addf %81, %83 : vector<16x32xf32>
    %cst_87 = arith.constant 0.000000e+00 : f32
    %85 = vector.broadcast %cst_87 : f32 to vector<16x32xf32>
    %86 = arith.maximumf %84, %85 : vector<16x32xf32>
    %c0_88 = arith.constant 0 : index
    %c0_89 = arith.constant 0 : index
    %87 = vector.load %arg19[%c0_88, %c0_89] : memref<16x32xf32, #tpu.memory_space<vmem>>, vector<16x32xf32>
    tpu.vector_store %arg19[%c0_88, %c0_89], %86 {strides = array<i32>} : memref<16x32xf32, #tpu.memory_space<vmem>>, vector<16x32xf32>,
    %c0_90 = arith.constant 0 : index
    %c0_91 = arith.constant 0 : index
    %88 = tpu.strided_load %arg19[%c0_90, %c0_91] {strides = array<i32: 2, 1>} : memref<16x32xf32, #tpu.memory_space<vmem>>, vector<8x32xf32>
    %c1_92 = arith.constant 1 : index
    %c0_93 = arith.constant 0 : index
    %89 = tpu.strided_load %arg19[%c1_92, %c0_93] {strides = array<i32: 2, 1>} : memref<16x32xf32, #tpu.memory_space<vmem>>, vector<8x32xf32>
    %90 = arith.maximumf %88, %89 : vector<8x32xf32>
    %c0_94 = arith.constant 0 : index
    %c0_95 = arith.constant 0 : index
    %91 = vector.load %arg6[%c0_94, %c0_95] : memref<8x8xf32, #tpu.memory_space<vmem>>, vector<8x8xf32>
    %92 = arith.truncf %90 : vector<8x32xf32> to vector<8x32xbf16>
    %c0_96 = arith.constant 0 : index
    %c0_97 = arith.constant 0 : index
    %93 = vector.load %arg7[%c0_96, %c0_97] : memref<32x32xbf16, #tpu.memory_space<vmem>>, vector<32x32xbf16>
    %cst_98 = arith.constant dense<0.000000e+00> : vector<8x32xf32>
    %94 = tpu.matmul %92, %93, %cst_98 {dimension_numbers = #tpu.dot_dimension_numbers<[1], [0], [0], [1], [0, 0, 1, 1], [], []>} : vector<8x32xbf16>, vector<32x32xbf16>, vector<8x32xf32> -> vector<8x32xf32>
    %cst_99 = arith.constant dense<0.000000e+00> : vector<8x32xf32>
    %95 = tpu.matmul %91, %94, %cst_99 {dimension_numbers = #tpu.dot_dimension_numbers<[1], [0], [0], [1], [0, 0, 1, 1], [], []>} : vector<8x8xf32>, vector<8x32xf32>, vector<8x32xf32> -> vector<8x32xf32>
    %c0_100 = arith.constant 0 : index
    %c0_101 = arith.constant 0 : index
    %96 = vector.load %arg8[%c0_100, %c0_101] : memref<1x32xf32, #tpu.memory_space<vmem>>, vector<1x32xf32>
    %97 = vector.broadcast %96 : vector<1x32xf32> to vector<8x32xf32>
    %98 = arith.addf %95, %97 : vector<8x32xf32>
    %cst_102 = arith.constant 0.000000e+00 : f32
    %99 = vector.broadcast %cst_102 : f32 to vector<8x32xf32>
    %100 = arith.maximumf %98, %99 : vector<8x32xf32>
    %101 = arith.truncf %100 : vector<8x32xf32> to vector<8x32xbf16>
    %c0_103 = arith.constant 0 : index
    %c0_104 = arith.constant 0 : index
    %102 = vector.load %arg9[%c0_103, %c0_104] : memref<32x32xbf16, #tpu.memory_space<vmem>>, vector<32x32xbf16>
    %cst_105 = arith.constant dense<0.000000e+00> : vector<8x32xf32>
    %103 = tpu.matmul %101, %102, %cst_105 {dimension_numbers = #tpu.dot_dimension_numbers<[1], [0], [0], [1], [0, 0, 1, 1], [], []>} : vector<8x32xbf16>, vector<32x32xbf16>, vector<8x32xf32> -> vector<8x32xf32>
    %cst_106 = arith.constant dense<0.000000e+00> : vector<8x32xf32>
    %104 = tpu.matmul %91, %103, %cst_106 {dimension_numbers = #tpu.dot_dimension_numbers<[1], [0], [0], [1], [0, 0, 1, 1], [], []>} : vector<8x8xf32>, vector<8x32xf32>, vector<8x32xf32> -> vector<8x32xf32>
    %c0_107 = arith.constant 0 : index
    %c0_108 = arith.constant 0 : index
    %105 = vector.load %arg10[%c0_107, %c0_108] : memref<1x32xf32, #tpu.memory_space<vmem>>, vector<1x32xf32>
    %106 = vector.broadcast %105 : vector<1x32xf32> to vector<8x32xf32>
    %107 = arith.addf %104, %106 : vector<8x32xf32>
    %cst_109 = arith.constant 0.000000e+00 : f32
    %108 = vector.broadcast %cst_109 : f32 to vector<8x32xf32>
    %109 = arith.maximumf %107, %108 : vector<8x32xf32>
    %c0_110 = arith.constant 0 : index
    %c0_111 = arith.constant 0 : index
    %110 = vector.load %arg11[%c0_110, %c0_111] : memref<2x8xf32, #tpu.memory_space<vmem>>, vector<2x8xf32>
    %cst_112 = arith.constant dense<0.000000e+00> : vector<2x32xf32>
    %111 = tpu.matmul %110, %109, %cst_112 {dimension_numbers = #tpu.dot_dimension_numbers<[1], [0], [0], [1], [0, 0, 1, 1], [], []>} : vector<2x8xf32>, vector<8x32xf32>, vector<2x32xf32> -> vector<2x32xf32>
    %112 = arith.truncf %111 : vector<2x32xf32> to vector<2x32xbf16>
    %c0_113 = arith.constant 0 : index
    %c0_114 = arith.constant 0 : index
    %113 = vector.load %arg12[%c0_113, %c0_114] : memref<32x32xbf16, #tpu.memory_space<vmem>>, vector<32x32xbf16>
    %cst_115 = arith.constant dense<0.000000e+00> : vector<2x32xf32>
    %114 = tpu.matmul %112, %113, %cst_115 {dimension_numbers = #tpu.dot_dimension_numbers<[1], [0], [0], [1], [0, 0, 1, 1], [], []>} : vector<2x32xbf16>, vector<32x32xbf16>, vector<2x32xf32> -> vector<2x32xf32>
    %c0_116 = arith.constant 0 : index
    %c0_117 = arith.constant 0 : index
    %115 = vector.load %arg13[%c0_116, %c0_117] : memref<1x32xf32, #tpu.memory_space<vmem>>, vector<1x32xf32>
    %116 = vector.broadcast %115 : vector<1x32xf32> to vector<2x32xf32>
    %117 = arith.addf %114, %116 : vector<2x32xf32>
    %cst_118 = arith.constant 0.000000e+00 : f32
    %118 = vector.broadcast %cst_118 : f32 to vector<2x32xf32>
    %119 = arith.maximumf %117, %118 : vector<2x32xf32>
    %120 = arith.truncf %119 : vector<2x32xf32> to vector<2x32xbf16>
    %c0_119 = arith.constant 0 : index
    %c0_120 = arith.constant 0 : index
    %121 = vector.load %arg14[%c0_119, %c0_120] : memref<32x128xbf16, #tpu.memory_space<vmem>>, vector<32x128xbf16>
    %cst_121 = arith.constant dense<0.000000e+00> : vector<2x128xf32>
    %122 = tpu.matmul %120, %121, %cst_121 {dimension_numbers = #tpu.dot_dimension_numbers<[1], [0], [0], [1], [0, 0, 1, 1], [], []>} : vector<2x32xbf16>, vector<32x128xbf16>, vector<2x128xf32> -> vector<2x128xf32>
    %c0_122 = arith.constant 0 : index
    %c0_123 = arith.constant 0 : index
    %123 = vector.load %arg15[%c0_122, %c0_123] : memref<1x128xf32, #tpu.memory_space<vmem>>, vector<1x128xf32>
    %124 = vector.broadcast %123 : vector<1x128xf32> to vector<2x128xf32>
    %125 = arith.addf %122, %124 : vector<2x128xf32>
    %c0_124 = arith.constant 0 : index
    %c0_125 = arith.constant 0 : index
    %126 = vector.load %arg16[%c0_124, %c0_125] : memref<2x128xf32, #tpu.memory_space<vmem>>, vector<2x128xf32>
    tpu.vector_store %arg16[%c0_124, %c0_125], %125 {strides = array<i32>} : memref<2x128xf32, #tpu.memory_space<vmem>>, vector<2x128xf32>,
    return
  }
  func.func @transform_0(%arg0: i32) -> (i32, i32, i32) {
    %c0_i32 = arith.constant 0 : i32
    %c0_i32_0 = arith.constant 0 : i32
    %c0_i32_1 = arith.constant 0 : i32
    return %arg0, %c0_i32, %c0_i32_0 : i32, i32, i32
  }
  func.func @transform_1(%arg0: i32) -> (i32, i32, i32) {
    %c0_i32 = arith.constant 0 : i32
    %c0_i32_0 = arith.constant 0 : i32
    %c0_i32_1 = arith.constant 0 : i32
    %c0_i32_2 = arith.constant 0 : i32
    return %c0_i32, %c0_i32_0, %c0_i32_1 : i32, i32, i32
  }
  func.func @transform_2(%arg0: i32) -> (i32, i32) {
    %c0_i32 = arith.constant 0 : i32
    %c0_i32_0 = arith.constant 0 : i32
    %c0_i32_1 = arith.constant 0 : i32
    return %c0_i32, %c0_i32_0 : i32, i32
  }
  func.func @transform_3(%arg0: i32) -> (i32, i32, i32) {
    %c0_i32 = arith.constant 0 : i32
    %c0_i32_0 = arith.constant 0 : i32
    %c0_i32_1 = arith.constant 0 : i32
    %c0_i32_2 = arith.constant 0 : i32
    return %c0_i32, %c0_i32_0, %c0_i32_1 : i32, i32, i32
  }
  func.func @transform_4(%arg0: i32) -> (i32, i32) {
    %c0_i32 = arith.constant 0 : i32
    %c0_i32_0 = arith.constant 0 : i32
    %c0_i32_1 = arith.constant 0 : i32
    return %c0_i32, %c0_i32_0 : i32, i32
  }
  func.func @transform_5(%arg0: i32) -> (i32, i32) {
    %c0_i32 = arith.constant 0 : i32
    %c0_i32_0 = arith.constant 0 : i32
    %c0_i32_1 = arith.constant 0 : i32
    return %c0_i32, %c0_i32_0 : i32, i32
  }
  func.func @transform_6(%arg0: i32) -> (i32, i32) {
    %c0_i32 = arith.constant 0 : i32
    %c0_i32_0 = arith.constant 0 : i32
    %c0_i32_1 = arith.constant 0 : i32
    return %c0_i32, %c0_i32_0 : i32, i32
  }
  func.func @transform_7(%arg0: i32) -> (i32, i32) {
    %c0_i32 = arith.constant 0 : i32
    %c0_i32_0 = arith.constant 0 : i32
    %c0_i32_1 = arith.constant 0 : i32
    return %c0_i32, %c0_i32_0 : i32, i32
  }
  func.func @transform_8(%arg0: i32) -> (i32, i32) {
    %c0_i32 = arith.constant 0 : i32
    %c0_i32_0 = arith.constant 0 : i32
    %c0_i32_1 = arith.constant 0 : i32
    return %c0_i32, %c0_i32_0 : i32, i32
  }
  func.func @transform_9(%arg0: i32) -> (i32, i32) {
    %c0_i32 = arith.constant 0 : i32
    %c0_i32_0 = arith.constant 0 : i32
    %c0_i32_1 = arith.constant 0 : i32
    return %c0_i32, %c0_i32_0 : i32, i32
  }
  func.func @transform_10(%arg0: i32) -> (i32, i32) {
    %c0_i32 = arith.constant 0 : i32
    %c0_i32_0 = arith.constant 0 : i32
    %c0_i32_1 = arith.constant 0 : i32
    return %c0_i32, %c0_i32_0 : i32, i32
  }
  func.func @transform_11(%arg0: i32) -> (i32, i32) {
    %c0_i32 = arith.constant 0 : i32
    %c0_i32_0 = arith.constant 0 : i32
    %c0_i32_1 = arith.constant 0 : i32
    return %c0_i32, %c0_i32_0 : i32, i32
  }
  func.func @transform_12(%arg0: i32) -> (i32, i32) {
    %c0_i32 = arith.constant 0 : i32
    %c0_i32_0 = arith.constant 0 : i32
    %c0_i32_1 = arith.constant 0 : i32
    return %c0_i32, %c0_i32_0 : i32, i32
  }
  func.func @transform_13(%arg0: i32) -> (i32, i32) {
    %c0_i32 = arith.constant 0 : i32
    %c0_i32_0 = arith.constant 0 : i32
    %c0_i32_1 = arith.constant 0 : i32
    return %c0_i32, %c0_i32_0 : i32, i32
  }
  func.func @transform_14(%arg0: i32) -> (i32, i32) {
    %c0_i32 = arith.constant 0 : i32
    %c0_i32_0 = arith.constant 0 : i32
    %c0_i32_1 = arith.constant 0 : i32
    return %c0_i32, %c0_i32_0 : i32, i32
  }
  func.func @transform_15(%arg0: i32) -> (i32, i32) {
    %c0_i32 = arith.constant 0 : i32
    %c0_i32_0 = arith.constant 0 : i32
    return %arg0, %c0_i32 : i32, i32
  }
}

</mosaic_0001>

<bundles_post_ra>
// kernel: temporal_gcn_forward.1
= control target key start
LH: loop header
LB: loop body
LE: loop exit
PB: predicated region body
PF: predicated region fallthrough
CT: control target
= control target key end

     0   :  { %vm125_vm0 = vcmask 1041408   ;;  %vm59_vm1 = vsmask.f32 3328  ;;  %vm60_vm2 = vsmask.f32 7440  ;;  %vm118_vm4 = vcmask 31744   ;;  %s2063_s0 = inlined_call_operand.vmem [shape: bf16[2,20,4], index: 0, kind: input, shape index: {}]   ;;  %s2064_s1 = inlined_call_operand.vmem [shape: bf16[5,4,16], index: 1, kind: input, shape index: {}]   ;;  %s2065_s2 = inlined_call_operand.vmem [shape: f32[1,16], index: 2, kind: input, shape index: {}]   ;;  %s2066_s3 = inlined_call_operand.vmem [shape: bf16[5,16,32], index: 3, kind: input, shape index: {}]   ;;  %s2067_s4 = inlined_call_operand.vmem [shape: f32[1,32], index: 4, kind: input, shape index: {}]   ;;  %s2068_s5 = inlined_call_operand.vmem [shape: f32[8,8], index: 5, kind: input, shape index: {}]   ;;  %s2069_s6 = inlined_call_operand.vmem [shape: bf16[32,32], index: 6, kind: input, shape index: {}]   ;;  %s2070_s7 = inlined_call_operand.vmem [shape: f32[1,32], index: 7, kind: input, shape index: {}]   ;;  %s2071_s8 = inlined_call_operand.vmem [shape: bf16[32,32], index: 8, kind: input, shape index: {}]   ;;  %s2072_s9 = inlined_call_operand.vmem [shape: f32[1,32], index: 9, kind: input, shape index: {}]   ;;  %s2073_s10 = inlined_call_operand.vmem [shape: f32[2,8], index: 10, kind: input, shape index: {}]   ;;  %s2074_s11 = inlined_call_operand.vmem [shape: bf16[32,32], index: 11, kind: input, shape index: {}]   ;;  %s2075_s12 = inlined_call_operand.vmem [shape: f32[1,32], index: 12, kind: input, shape index: {}]   ;;  %s2076_s13 = inlined_call_operand.vmem [shape: bf16[32,128], index: 13, kind: input, shape index: {}]   ;;  %s2077_s14 = inlined_call_operand.vmem [shape: f32[1,128], index: 14, kind: input, shape index: {}]   ;;  %s2078_s15 = inlined_call_operand.hbm [shape: f32[2,128], index: 15, kind: output, shape index: {}]  }
   0x1   :  { %v1397_v0 = vld [vmem:[%s2064_s1 + $0x2] sm:$0x3]  ;;  %v1771_v3 = vld [vmem:[%s2063_s0 + $0x4] sm:$0xf]  ;;  %v1776_v4 = vld [vmem:[%s2063_s0 + $0x8] sm:$0x1] }
   0x2   :  { %v52_v1 = vld [vmem:[%s2063_s0] sm:$0xf]  ;;  %1630 = vmatprep.subr.msk.bf16.mxu0 %vm125_vm0, %v1397_v0  ;;  %v127_v2 = vsel %vm125_vm0, %v1397_v0, 0  ;;  %v72_v7 = vshll.u32 %v1771_v3, 16  ;;  %v76_v9 = vshrl.u32 %v1771_v3, 16  ;;  %v82_v10 = vshll.u32 %v1776_v4, 16  ;;  %vm1805_vm3 = vmor %vm59_vm1, %vm60_vm2 }
   0x3   :  { %v63_v5 = vshrl.u32 %v52_v1, 16  ;;  %1508 = vmatpush3.bf16.msra.mxu0 %v127_v2  ;;  %v66_v6 = vshll.u32 %v52_v1, 16  ;;  %v1784_v11 = vld [vmem:[%s2063_s0 + $0xc] sm:$0xf]  ;;  %v1789_v14 = vld [vmem:[%s2063_s0 + $0x10] sm:$0xf]  ;;  %v1402_v43 = vcombine.low %v52_v1, %v1771_v3 }
   0x4   :  { %v74_v13 = vrot.slane %v72_v7, 5  ;;  %v87_v15 = vshrl.u32 %v1784_v11, 16  ;;  %v78_v16 = vrot.slane %v76_v9, 4  ;;  %v1795_v17 = vld [vmem:[%s2063_s0 + $0x14] sm:$0x1]  ;;  %v90_v18 = vshll.u32 %v1784_v11, 16 }
   0x5   :  { %v65_v8 = vrot.slane %v63_v5, 4  ;;  %v68_v12 = vrot.slane %v66_v6, 5  ;;  %v96_v21 = vshll.u32 %v1789_v14, 16  ;;  %v100_v22 = vshrl.u32 %v1789_v14, 16  ;;  %v56_v23 = vld [vmem:[%s2064_s1] sm:$0x3] }
   0x6   :  { %v89_v20 = vrot.slane %v87_v15, 4  ;;  %v79_v25 = vor.u32 %v78_v16, %v74_v13  ;;  %v84_v26 = vrot.slane %v82_v10, 5  ;;  %v92_v27 = vrot.slane %v90_v18, 5  ;;  %1631 = vmatprep.subr.msk.bf16.mxu0 %vm125_vm0, %v56_v23  ;;  %v246_v44 = vld [vmem:[%s2063_s0] sm:$0xe] }
   0x7   :  { %v69_v19 = vor.u32 %v68_v12, %v65_v8  ;;  %v106_v28 = vshll.u32 %v1795_v17, 16  ;;  %v98_v30 = vrot.slane %v96_v21, 5  ;;  %v102_v31 = vrot.slane %v100_v22, 4  ;;  %v1408_v48 = vld [vmem:[%s2064_s1 + $0x4] sm:$0x3] }
   0x8   :  { %v80_v32 = vrot.slane %v79_v25, 4  ;;  %v93_v33 = vor.u32 %v92_v27, %v89_v20  ;;  %v257_v45 = vrot.slane %v1771_v3, 5  ;;  %v195_v47 = vsel %vm125_vm0, %v56_v23, 0  ;;  %v1844_v55 = vld [vmem:[%s2063_s0 + $0x8] sm:$0x3] }
   0x9   :  { %v70_v29 = vrot.slane %v69_v19, 4  ;;  %v103_v35 = vor.u32 %v102_v31, %v98_v30  ;;  %v108_v36 = vrot.slane %v106_v28, 5  ;;  %vm252_vm5 = vcmask 1042432   ;;  %v247_v60 = vld [vmem:[%s2063_s0 + $0xc] sm:$0xe] }
   0xa   :  { %v85_v37 = vsel %vm1805_vm3, %v80_v32, %v84_v26  ;;  %v94_v38 = vrot.slane %v93_v33, 4  ;;  %vm253_vm6 = vcmask 1046532   ;;  %v260_v49 = vrot.slane %v1776_v4, 5  ;;  %v340_v20 = vld [vmem:[%s2063_s0 + $0x14] sm:$0x3] }
   0xb   :  { %v75_v34 = vsel %vm1805_vm3, %v70_v29, %v74_v13  ;;  %v104_v40 = vrot.slane %v103_v35, 4  ;;  %v1406_v50 = vrot.slane %v246_v44, 9  ;;  %v259_v51 = vrot.slane %v257_v45, 4  ;;  %vm1837_vm7 = vmor %vm252_vm5, %vm253_vm6 }
   0xc   :  { %v1398_v39 = vcombine.low %v75_v34, %v85_v37  ;;  %v99_v41 = vsel %vm1805_vm3, %v94_v38, %v98_v30  ;;  %v345_v53 = vshrl.u32 %v246_v44, 16  ;;  %v348_v54 = vshll.u32 %v246_v44, 16 }
   0xd   :  { %v109_v42 = vsel %vm1805_vm3, %v104_v40, %v108_v36  ;;  %v354_v56 = vrot.slane %v72_v7, 6  ;;  %v353_v57 = vrot.slane %v76_v9, 5  ;;  %v258_v58 = vsel %vm1837_vm7, %v1406_v50, %v257_v45  ;;  %v1413_v9 = vld [vmem:[%s2064_s1 + $0x6] sm:$0x3] }
   0xe   :  { %1509 = vmatprep.mubr.msk.bf16.mxu0 %vm118_vm4, %v1398_v39  ;;  %v1399_v46 = vcombine.low %v99_v41, %v109_v42  ;;  %v261_v59 = vsel %vm1837_vm7, %v259_v51, %v260_v49  ;;  %v264_v61 = vrot.slane %v1789_v14, 5  ;;  %v347_v62 = vrot.slane %v345_v53, 5 }
   0xf   :  { %v350_v63 = vrot.slane %v348_v54, 6  ;;  %v359_v0 = vshrl.u32 %v1844_v55, 16  ;;  %v362_v1 = vshll.u32 %v1844_v55, 16  ;;  %v267_v2 = vrot.slane %v1795_v17, 5 }
  0x10   :  { %1510 = vmatmul.mubr.msk.bf16.vlgmr.msra.gmra.mrb[0].mxu0 %vm118_vm4, %v1399_v46  ;;  %v284_v4 = vsel %vm125_vm0, %v1408_v48, 0  ;;  %v1403_v5 = vcombine.low %v1784_v11, %v1789_v14  ;;  %vm341_vm8 = vsmask.f32 2304  ;;  %v1409_v6 = vcombine.low %v258_v58, %v261_v59 }
  0x11   :  { %1514 = vmatpush3.bf16.msra.mxu0 %v195_v47  ;;  %1515 = vmatprep.mubr.msk.bf16.mxu0 %vm118_vm4, %v1402_v43  ;;  %v1407_v7 = vrot.slane %v247_v60, 9  ;;  %v266_v8 = vrot.slane %v264_v61, 4  ;;  %vm342_vm9 = vsmask.f32 6416  ;;  %v351_v10 = vor.u32 %v350_v63, %v347_v62 }
  0x12   :  { %1632 = vmatprep.subr.msk.bf16.mxu0 %vm125_vm0, %v1408_v48  ;;  %v355_v12 = vor.u32 %v354_v56, %v353_v57  ;;  %v361_v13 = vrot.slane %v359_v0, 5  ;;  %v364_v15 = vrot.slane %v362_v1, 6  ;;  %v368_v16 = vshrl.u32 %v247_v60, 16 }
  0x13   :  { %v371_v17 = vshll.u32 %v247_v60, 16  ;;  %v352_v11 = vrot.slane %v351_v10, 4 }
  0x14   :  { %v357_v18 = vrot.slane %v355_v12, 4  ;;  %v365_v19 = vor.u32 %v364_v15, %v361_v13 }
  0x1c   :  { %1516 = vmatmul.mubr.msk.bf16.vlgmr.msra.gmra.mrb[0].mxu0 %vm118_vm4, %v1403_v5 }
  0x1d   :  { %1520 = vmatpush3.bf16.msra.mxu0 %v284_v4  ;;  %1521 = vmatprep.mubr.msk.bf16.mxu0 %vm118_vm4, %v1409_v6 }
  0x1e   :  { %1633 = vmatprep.subr.msk.bf16.mxu0 %vm125_vm0, %v1413_v9 }
  0x1f   :  { %20 = vsyncpa [#allocation6], 0  ;;  %v377_v24 = vrot.slane %v96_v21, 6  ;;  %v265_v25 = vsel %vm1837_vm7, %v1407_v7, %v264_v61  ;;  %v268_v26 = vsel %vm1837_vm7, %v266_v8, %v267_v2  ;;  %v376_v27 = vrot.slane %v100_v22, 5  ;;  %v1420_v40 = vld [vmem:[%s2064_s1 + $0x8] sm:$0x3] }
  0x20   :  { %vm1871_vm10 = vmor %vm341_vm8, %vm342_vm9  ;;  %v370_v28 = vrot.slane %v368_v16, 5  ;;  %v373_v29 = vrot.slane %v371_v17, 6  ;;  %v382_v30 = vshrl.u32 %v340_v20, 16  ;;  %v385_v31 = vshll.u32 %v340_v20, 16  ;;  %v460_v41 = vld [vmem:[%s2063_s0] sm:$0xc] }
  0x21   :  { %v356_v32 = vsel %vm1871_vm10, %v352_v11, %v355_v12  ;;  %v366_v33 = vsel %vm1871_vm10, %v357_v18, %v365_v19  ;;  %v1410_v21 = vcombine.low %v265_v25, %v268_v26  ;;  %v378_v34 = vor.u32 %v377_v24, %v376_v27  ;;  %v461_v56 = vld [vmem:[%s2063_s0 + $0xc] sm:$0xc]  ;;  %v1425_v0 = vld [vmem:[%s2065_s2] ss:$0 sm:$0xff]  ;;  %s1679_s18 = smov [#allocation5]  }
  0x22   :  { %v1414_v35 = vcombine.low %v356_v32, %v366_v33  ;;  %v374_v36 = vor.u32 %v373_v29, %v370_v28  ;;  %v384_v37 = vrot.slane %v382_v30, 5  ;;  %v387_v38 = vrot.slane %v385_v31, 6  ;;  %v1640_v63 = vld [vmem:[%s2066_s3 + $0x8] sm:$0xff]   ;;  %v1641_v25 = vld [vmem:[%s2066_s3] sm:$0xff]   ;;  %v1642_v29 = vld [vmem:[%s2066_s3 + $0x10] sm:$0xff]  }
  0x23   :  { %v405_v39 = vsel %vm125_vm0, %v1413_v9, 0  ;;  %v471_v22 = vrot.slane %v1771_v3, 6  ;;  %vm467_vm11 = vcmask 1045508   ;;  %v380_v43 = vrot.slane %v378_v34, 4  ;;  %v1643_v33 = vld [vmem:[%s2066_s3 + $0x18] sm:$0xff]  }
  0x24   :  { %v375_v42 = vrot.slane %v374_v36, 4  ;;  %v388_v44 = vor.u32 %v387_v38, %v384_v37  ;;  %v1418_v3 = vrot.slane %v460_v41, 10  ;;  %v474_v46 = vrot.slane %v1844_v55, 6  ;;  %vm1900_vm12 = vmor %vm125_vm0, %vm467_vm11  ;;  %v1644_v36 = vld [vmem:[%s2066_s3 + $0x20] sm:$0xff]   ;;  %v1646_v41 = vld [vmem:[%s2069_s6 + $0x8] sm:$0xff]  }
  0x25   :  { %v473_v45 = vrot.slane %v471_v22, 4  ;;  %v478_v54 = vrot.slane %v1789_v14, 6  ;;  %v498_v55 = vsel %vm125_vm0, %v1420_v40, 0  ;;  %v1419_v57 = vrot.slane %v461_v56, 10 }
  0x26   :  { %v379_v48 = vsel %vm1871_vm10, %v375_v42, %v378_v34  ;;  %v389_v49 = vsel %vm1871_vm10, %v380_v43, %v388_v44  ;;  %v472_v50 = vsel %vm1900_vm12, %v1418_v3, %v471_v22  ;;  %v481_v59 = vrot.slane %v340_v20, 6 }
  0x27   :  { %v475_v51 = vsel %vm1900_vm12, %v473_v45, %v474_v46  ;;  %v1415_v52 = vcombine.low %v379_v48, %v389_v49  ;;  %v480_v58 = vrot.slane %v478_v54, 4  ;;  %v479_v60 = vsel %vm1900_vm12, %v1419_v57, %v478_v54 }
  0x28   :  { %1522 = vmatmul.mubr.msk.bf16.vlgmr.msra.gmra.mrb[0].mxu0 %vm118_vm4, %v1410_v21  ;;  %v1421_v53 = vcombine.low %v472_v50, %v475_v51  ;;  %vm582_vm13 = vcmask 123904   ;;  %v1677_v62 = vmov 0.0   ;;  %vm1678_vm14 = vmmov 0  }
  0x29   :  { %1526 = vmatpush3.bf16.msra.mxu0 %v405_v39  ;;  %1527 = vmatprep.mubr.msk.bf16.mxu0 %vm118_vm4, %v1414_v35  ;;  %v482_v14 = vsel %vm1900_vm12, %v480_v58, %v481_v59  ;;  %583 = vst.msk [vmem:[#allocation3] sm:$0x3] %vm582_vm13, %v1677_v62  ;;  %584 = vst.msk [vmem:[#allocation3 + $0x10] sm:$0x3] %vm582_vm13, %v1677_v62  ;;  %vm568_vm15 = vcmask 130048   ;;  %vm960_vm1 = vcmask 64512  }
  0x2a   :  { %1634 = vmatprep.subr.msk.bf16.mxu0 %vm125_vm0, %v1420_v40  ;;  %v1422_v61 = vcombine.low %v479_v60, %v482_v14  ;;  %1537 = vmatprep.subr.bf16.mxu1 %v1677_v62  ;;  %585 = vst.msk [vmem:[#allocation3 + $0xa] sm:$0x3] %vm582_vm13, %v1677_v62  ;;  %586 = vst.msk [vmem:[#allocation3 + $0x1a] sm:$0x3] %vm582_vm13, %v1677_v62  ;;  %v1645_v40 = vld [vmem:[%s2069_s6] sm:$0xff]   ;;  %vm885_vm0 = vcmask 261120  }
  0x2b   :  { %1539 = vmatprep.mubr.msk.bf16.mxu1 %vm1678_vm14, %v1677_v62  ;;  %1538 = vmatpush3.bf16.msra.mxu1 %v1640_v63 }
  0x2c   :  { %1543 = vmatprep.subr.bf16.mxu1 %v1677_v62 }
  0x34   :  { %1528 = vmatmul.mubr.msk.bf16.vlgmr.msra.gmra.mrb[0].mxu0 %vm118_vm4, %v1415_v52 }
  0x35   :  { %1532 = vmatpush3.bf16.msra.mxu0 %v498_v55  ;;  %1533 = vmatprep.mubr.msk.bf16.mxu0 %vm118_vm4, %v1421_v53 }
  0x36   :  { %1567 = vmatprep.subr.bf16.mxu0 %v1677_v62 }
  0x40   :  { %1534 = vmatmul.mubr.msk.bf16.vlgmr.msra.gmra.mrb[0].mxu0 %vm118_vm4, %v1422_v61 }
  0x41   :  { %1571 = vmatprep.mubr.msk.bf16.mxu0 %vm1678_vm14, %v1677_v62  ;;  %1568 = vmatpush3.bf16.msra.mxu0 %v1645_v40  ;;  %v1650_v40 = vld [vmem:[%s2074_s11 + $0x8] sm:$0xff]  }
  0x42   :  { %1569 = vmatprep.subr.bf16.mxu0 %v1677_v62 }
  0x45   :  { %1570 = vmatpush3.bf16.msra.mxu0 %v1646_v41 }
  0x46   :  { %1580 = vmatprep.subr.bf16.mxu0 %v1677_v62 }
 0x113   :  { %v1535_v1 = vpop.f32.mrb[0].mxu0 }
 0x114   :  { %v562_v2 = vadd.f32 %v1535_v1, %v1425_v0  ;;  %v534_v4 = vpop.f32.mrb[1].mxu0 }
 0x115   :  { %v560_v5 = vadd.f32 %v1425_v0, %v534_v4  ;;  %v1536_v6 = vpop.f32.mrb[2].mxu0 }
 0x116   :  { %v566_v7 = vmax.f32 %v562_v2, 0.0  ;;  %v563_v8 = vadd.f32 %v1536_v6, %v1425_v0  ;;  %v537_v9 = vpop.f32.mrb[3].mxu0 }
 0x117   :  { %v564_v10 = vmax.f32 %v560_v5, 0.0  ;;  %v561_v12 = vadd.f32 %v1425_v0, %v537_v9  ;;  %v1444_v0 = vld [vmem:[%s2067_s4] ss:$0 sm:$0xff] }
 0x118   :  { %571 = vst.msk [vmem:[#allocation2 + $0x10] sm:$0xff] %vm568_vm15, %v566_v7  ;;  %v567_v13 = vmax.f32 %v563_v8, 0.0 }
 0x119   :  { %569 = vst.msk [vmem:[#allocation2] sm:$0xff] %vm568_vm15, %v564_v10  ;;  %v565_v15 = vmax.f32 %v561_v12, 0.0 }
 0x11a   :  { %572 = vst.msk [vmem:[#allocation2 + $0x18] sm:$0xff] %vm568_vm15, %v567_v13 }
 0x11b   :  { %570 = vst.msk [vmem:[#allocation2 + $0x8] sm:$0xff] %vm568_vm15, %v565_v15 }
 0x121   :  { %v575_v16 = vld [vmem:[#allocation2 + $0x10] ss:$2 sm:$0xff]  ;;  %v579_v17 = vld [vmem:[#allocation2 + $0x11] ss:$2 sm:$0xff] }
 0x122   :  { %v581_v11 = vmax.f32 %v575_v16, %v579_v17  ;;  %v573_v18 = vld [vmem:[#allocation2] ss:$2 sm:$0xff]  ;;  %v577_v19 = vld [vmem:[#allocation2 + $0x1] ss:$2 sm:$0xff] }
 0x123   :  { %v580_v20 = vmax.f32 %v573_v18, %v577_v19  ;;  %v892_v17 = vld [vmem:[%s2068_s5] sm:$0xff] }
 0x124   :  { %588 = vst.msk [vmem:[#allocation3 + $0x12] sm:$0xff] %vm568_vm15, %v581_v11 }
 0x125   :  { %587 = vst.msk [vmem:[#allocation3 + $0x2] sm:$0xff] %vm568_vm15, %v580_v20 }
 0x12b   :  { %v595_v23 = vld [vmem:[#allocation3 + $0x11] sm:$0xff] }
 0x12c   :  { %v594_v24 = vld [vmem:[#allocation3 + $0x1] sm:$0xff]  ;;  %v590_v28 = vld [vmem:[#allocation3 + $0x10] sm:$0xff] }
 0x12d   :  { %v596_v26 = vpack.c.bf16 %v595_v23, %v594_v24  ;;  %v589_v27 = vld [vmem:[#allocation3] sm:$0xff]  ;;  %v701_v32 = vld [vmem:[#allocation3 + $0x12] sm:$0xff]  ;;  %v1648_v24 = vld [vmem:[%s2071_s8 + $0x8] sm:$0xff]  }
 0x12e   :  { %v591_v30 = vpack.c.bf16 %v590_v28, %v589_v27  ;;  %v700_v31 = vld [vmem:[#allocation3 + $0x2] sm:$0xff]  ;;  %v759_v35 = vld [vmem:[#allocation3 + $0x13] sm:$0xff] }
 0x12f   :  { %1540 = vmatmul.mubr.msk.bf16.vlgmr.msra.gmra.mrb[0].mxu1 %vm568_vm15, %v596_v26  ;;  %v702_v21 = vpack.c.bf16 %v701_v32, %v700_v31  ;;  %v758_v34 = vld [vmem:[#allocation3 + $0x3] sm:$0xff]  ;;  %v817_v39 = vld [vmem:[#allocation3 + $0x14] sm:$0xff] }
 0x130   :  { %1544 = vmatpush3.bf16.msra.mxu1 %v1641_v25  ;;  %1545 = vmatprep.mubr.msk.bf16.mxu1 %vm1678_vm14, %v1677_v62  ;;  %v760_v37 = vpack.c.bf16 %v759_v35, %v758_v34  ;;  %v816_v38 = vld [vmem:[#allocation3 + $0x4] sm:$0xff]  ;;  %v1448_v25 = vld [vmem:[%s2070_s7] ss:$0 sm:$0xff] }
 0x131   :  { %1549 = vmatprep.subr.bf16.mxu1 %v1677_v62  ;;  %v818_v22 = vpack.c.bf16 %v817_v39, %v816_v38  ;;  %v1647_v23 = vld [vmem:[%s2071_s8] sm:$0xff]  }
 0x132   :  { %v1649_v34 = vld [vmem:[%s2074_s11] sm:$0xff]  }
 0x133   :  { %v1453_v35 = vld [vmem:[%s2072_s9] ss:$0 sm:$0xff] }
 0x137   :  { %1546 = vmatmul.mubr.msk.bf16.vlgmr.msra.gmra.mrb[4].mxu1 %vm568_vm15, %v591_v30 }
 0x138   :  { %1550 = vmatpush3.bf16.msra.mxu1 %v1642_v29  ;;  %1551 = vmatprep.mubr.msk.bf16.mxu1 %vm1678_vm14, %v1677_v62 }
 0x139   :  { %1555 = vmatprep.subr.bf16.mxu1 %v1677_v62 }
 0x13f   :  { %1552 = vmatmul.mubr.msk.bf16.vlgmr.msra.gmra.mrb[8].mxu1 %vm568_vm15, %v702_v21 }
 0x140   :  { %1556 = vmatpush3.bf16.msra.mxu1 %v1643_v33  ;;  %1557 = vmatprep.mubr.msk.bf16.mxu1 %vm1678_vm14, %v1677_v62 }
 0x141   :  { %1561 = vmatprep.subr.bf16.mxu1 %v1677_v62 }
 0x147   :  { %1558 = vmatmul.mubr.msk.bf16.vlgmr.msra.gmra.mrb[12].mxu1 %vm568_vm15, %v760_v37 }
 0x148   :  { %1562 = vmatpush3.bf16.msra.mxu1 %v1644_v36  ;;  %1563 = vmatprep.mubr.msk.bf16.mxu1 %vm1678_vm14, %v1677_v62 }
 0x149   :  { %1575 = vmatprep.subr.mxu1 %v1677_v62 }
 0x14f   :  { %1564 = vmatmul.mubr.msk.bf16.vlgmr.msra.gmra.mrb[16].mxu1 %vm568_vm15, %v818_v22  ;;  %v1173_v22 = vld [vmem:[%s2073_s10] sm:$0x3] }
 0x150   :  { %1577 = vmatprep.mubr.msk.f32.mxu1 %vm1678_vm14, %v1677_v62 }
 0x202   :  { %v643_v42 = vpop.f32.mrb[0].mxu1 }
 0x203   :  { %v1541_v43 = vpop.f32.mrb[1].mxu1 }
 0x204   :  { %v646_v44 = vpop.f32.mrb[2].mxu1 }
 0x205   :  { %v1542_v3 = vpop.f32.mrb[3].mxu1 }
 0x206   :  { %v1652_v3 = vld [vmem:[%s2076_s13 + $0x8] sm:$0xff]  }
 0x20a   :  { %v693_v45 = vpop.f32.mrb[4].mxu1 }
 0x20b   :  { %v694_v46 = vadd.f32 %v693_v45, %v643_v42  ;;  %v1547_v47 = vpop.f32.mrb[5].mxu1  ;;  %v1456_v45 = vld [vmem:[%s2075_s12] ss:$0 sm:$0xff] }
 0x20c   :  { %v696_v48 = vpop.f32.mrb[6].mxu1 }
 0x20d   :  { %v697_v49 = vadd.f32 %v696_v48, %v646_v44  ;;  %v1548_v50 = vpop.f32.mrb[7].mxu1  ;;  %v1651_v44 = vld [vmem:[%s2076_s13] sm:$0xff]   ;;  %s1389_s13 = sshll.u32 %s1679_s18, 4  ;;  %s1390_s13 = int_to_ptr.vmem [resolvable:$true] %s1389_s13 }
 0x20e   :  { %s1653_s12 = scalar_lea.vmem %s1390_s13, 32  ;;  %p1658_p1 = scmp.lt.s32.totalorder %s1390_s13, %s1390_s13 }
 0x20f   :  { %p1654_p0 = scmp.ne.s32.totalorder %s1390_s13, %s1653_s12  ;;  %p1659_p2 = scmp.lt.s32.totalorder %s1653_s12, %s1653_s12 }
 0x211   :  { %p1660_p3 = por %p1659_p2, %p1658_p1 }
 0x212   :  { %v749_v51 = vpop.f32.mrb[8].mxu1 }
 0x213   :  { %v756_v52 = vadd.f32 %v749_v51, %v694_v46  ;;  %v1553_v53 = vpop.f32.mrb[9].mxu1  ;;  %p1661_p4 = pnand %p1660_p3, %p1654_p0 }
 0x214   :  { %v752_v54 = vpop.f32.mrb[10].mxu1 }
 0x215   :  { %v757_v55 = vadd.f32 %v752_v54, %v697_v49  ;;  %v1554_v56 = vpop.f32.mrb[11].mxu1 }
 0x21a   :  { %v807_v57 = vpop.f32.mrb[12].mxu1 }
 0x21b   :  { %v814_v58 = vadd.f32 %v807_v57, %v756_v52  ;;  %v1559_v59 = vpop.f32.mrb[13].mxu1 }
 0x21c   :  { %v810_v60 = vpop.f32.mrb[14].mxu1 }
 0x21d   :  { %v815_v14 = vadd.f32 %v810_v60, %v757_v55  ;;  %v1560_v61 = vpop.f32.mrb[15].mxu1 }
 0x222   :  { %v865_v63 = vpop.f32.mrb[16].mxu1 }
 0x223   :  { %v872_v1 = vadd.f32 %v865_v63, %v814_v58  ;;  %v1565_v2 = vpop.f32.mrb[17].mxu1 }
 0x224   :  { %v868_v4 = vpop.f32.mrb[18].mxu1 }
 0x225   :  { %v881_v5 = vadd.f32 %v1444_v0, %v872_v1  ;;  %v873_v6 = vadd.f32 %v868_v4, %v815_v14  ;;  %v1566_v7 = vpop.f32.mrb[19].mxu1 }
 0x227   :  { %v883_v8 = vmax.f32 %v881_v5, 0.0  ;;  %v882_v9 = vadd.f32 %v1444_v0, %v873_v6 }
 0x229   :  { %886 = vst.msk [vmem:[#allocation4] sm:$0xff] %vm885_vm0, %v883_v8  ;;  %v884_v10 = vmax.f32 %v882_v9, 0.0 }
 0x22b   :  { %887 = vst.msk [vmem:[#allocation4 + $0x8] sm:$0xff] %vm885_vm0, %v884_v10 }
 0x232   :  { %v888_v12 = vld [vmem:[#allocation4] ss:$2 sm:$0xff]  ;;  %v890_v13 = vld [vmem:[#allocation4 + $0x1] ss:$2 sm:$0xff] }
 0x233   :  { %v891_v15 = vmax.f32 %v888_v12, %v890_v13 }
 0x235   :  { %v893_v16 = vpack.c.bf16 %v891_v15, %v891_v15 }
 0x237   :  { %1572 = vmatmul.mubr.msk.bf16.vlgmr.msra.gmra.mrb[4].mxu0 %vm885_vm0, %v893_v16 }
 0x238   :  { %1584 = vmatprep.mubr.msk.bf16.mxu0 %vm1678_vm14, %v1677_v62  ;;  %1581 = vmatpush3.bf16.msra.mxu0 %v1647_v23 }
 0x239   :  { %1582 = vmatprep.subr.bf16.mxu0 %v1677_v62 }
 0x23c   :  { %1583 = vmatpush3.bf16.msra.mxu0 %v1648_v24 }
 0x23d   :  { %1598 = vmatprep.subr.bf16.mxu0 %v1677_v62 }
 0x30a   :  { %v947_v11 = vpop.f32.mrb[4].mxu0 }
 0x30b   :  { %v1573_v18 = vpop.f32.mrb[5].mxu0  ;;  %1576 = vmatpush3.msra.mxu1 %v947_v11 }
 0x30c   :  { %v950_v19 = vpop.f32.mrb[6].mxu0  ;;  %1578 = vmatmul.mubr.msk.f32.vlgmr.msra.gmra.mrb[20].mxu1 %vm960_vm1, %v892_v17  ;;  %1588 = vmatprep.subr.mxu1 %v1677_v62 }
 0x30d   :  { %v1574_v20 = vpop.f32.mrb[7].mxu0  ;;  %1590 = vmatprep.mubr.msk.f32.mxu1 %vm1678_vm14, %v1677_v62 }
 0x3df   :  { %v1030_v26 = vpop.f32.mrb[20].mxu1 }
 0x3e0   :  { %v1031_v27 = vadd.f32 %v1448_v25, %v1030_v26  ;;  %v1579_v28 = vpop.f32.mrb[21].mxu1 }
 0x3e2   :  { %v1034_v29 = vmax.f32 %v1031_v27, 0.0 }
 0x3e4   :  { %v1035_v30 = vpack.c.bf16 %v1034_v29, %v1034_v29 }
 0x3e6   :  { %1585 = vmatmul.mubr.msk.bf16.vlgmr.msra.gmra.mrb[8].mxu0 %vm885_vm0, %v1035_v30 }
 0x3e7   :  { %1602 = vmatprep.mubr.msk.bf16.mxu0 %vm1678_vm14, %v1677_v62  ;;  %1599 = vmatpush3.bf16.msra.mxu0 %v1649_v34 }
 0x3e8   :  { %1600 = vmatprep.subr.bf16.mxu0 %v1677_v62 }
 0x3eb   :  { %1601 = vmatpush3.bf16.msra.mxu0 %v1650_v40 }
 0x4b9   :  { %v1089_v31 = vpop.f32.mrb[8].mxu0 }
 0x4ba   :  { %v1586_v32 = vpop.f32.mrb[9].mxu0  ;;  %1589 = vmatpush3.msra.mxu1 %v1089_v31 }
 0x4bb   :  { %v1092_v33 = vpop.f32.mrb[10].mxu0  ;;  %1591 = vmatmul.mubr.msk.f32.vlgmr.msra.gmra.mrb[22].mxu1 %vm960_vm1, %v892_v17  ;;  %1593 = vmatprep.subr.mxu1 %v1677_v62 }
 0x4bc   :  { %v1587_v21 = vpop.f32.mrb[11].mxu0  ;;  %1595 = vmatprep.mubr.msk.f32.mxu1 %vm1678_vm14, %v1677_v62 }
 0x58e   :  { %v1168_v36 = vpop.f32.mrb[22].mxu1 }
 0x58f   :  { %v1169_v37 = vadd.f32 %v1453_v35, %v1168_v36  ;;  %v1592_v38 = vpop.f32.mrb[23].mxu1 }
 0x591   :  { %v1172_v39 = vmax.f32 %v1169_v37, 0.0 }
 0x593   :  { %1594 = vmatpush3.msra.mxu1 %v1172_v39 }
 0x594   :  { %1596 = vmatmul.mubr.msk.f32.vlgmr.msra.gmra.mrb[24].mxu1 %vm960_vm1, %v1173_v22  ;;  %1606 = vmatprep.subr.bf16.mxu1 %v1677_v62 }
 0x595   :  { %1610 = vmatprep.mubr.msk.bf16.mxu1 %vm1678_vm14, %v1677_v62  ;;  %1607 = vmatpush3.bf16.msra.mxu1 %v1651_v44 }
 0x596   :  { %1608 = vmatprep.subr.bf16.mxu1 %v1677_v62  ;;  %v1460_v62 = vld [vmem:[%s2077_s14] ss:$0 sm:$0xff] }
 0x599   :  { %1609 = vmatpush3.bf16.msra.mxu1 %v1652_v3 }
 0x667   :  { %v1243_v41 = vpop.f32.mrb[24].mxu1 }
 0x668   :  { %v1247_v42 = vpack.c.bf16 %v1243_v41, %v1243_v41  ;;  %v1597_v43 = vpop.f32.mrb[25].mxu1 }
 0x66a   :  { %1603 = vmatmul.mubr.msk.bf16.vlgmr.msra.gmra.mrb[12].mxu0 %vm885_vm0, %v1247_v42 }
 0x73d   :  { %v1308_v46 = vpop.f32.mrb[12].mxu0 }
 0x73e   :  { %v1309_v47 = vadd.f32 %v1456_v45, %v1308_v46  ;;  %v1604_v48 = vpop.f32.mrb[13].mxu0 }
 0x73f   :  { %v1311_v49 = vpop.f32.mrb[14].mxu0 }
 0x740   :  { %v1314_v50 = vmax.f32 %v1309_v47, 0.0  ;;  %v1605_v51 = vpop.f32.mrb[15].mxu0 }
 0x742   :  { %v1315_v52 = vpack.c.bf16 %v1314_v50, %v1314_v50 }
 0x744   :  { %1611 = vmatmul.mubr.msk.bf16.vlgmr.msra.gmra.mrb[28].mxu1 %vm885_vm0, %v1315_v52 }
 0x817   :  { %v1376_v53 = vpop.f32.mrb[28].mxu1 }
 0x818   :  { %v1377_v54 = vadd.f32 %v1460_v62, %v1376_v53  ;;  %v1612_v55 = vpop.f32.mrb[29].mxu1 }
 0x819   :  { %v1379_v56 = vpop.f32.mrb[30].mxu1 }
 0x81a   :  { %1382 = vst [vmem:[#allocation5] sm:$0x3] %v1377_v54  ;;  %v1613_v57 = vpop.f32.mrb[31].mxu1 }
 0x81b   :  { %1664 = shalt.err (!%p1661_p4)
}
 0x81c   :  { %s1665_s14 = scalar_lea.hbm %s2078_s15, 32 }
 0x81d   :  { %p1666_p5 = scmp.ne.s32.totalorder %s2078_s15, %s1665_s14  ;;  %p1669_p6 = scmp.lt.u32.totalorder %s1665_s14, %s2078_s15 }
 0x81f   :  { %p1671_p7 = pnand %p1669_p6, %p1666_p5 }
 0x821   :  { %1674 = shalt.err (!%p1671_p7)
}
 0x822   :  { %1392 = dma.vmem_to_hbm [thread:$0]  %s1390_s13, 32, %s2078_s15, [#allocation6]  }
 0x823   :  { %1675 = dma.done.wait [#allocation6], 32  }
 0x824   :  { %1676 = vsyncadd [#allocation6], 4294967264 }
 0x825   :  { %1396 = vsyncpa [#allocation6], 1 }

</bundles_post_ra>
